<compile_context>
chip_gen: v7x
topology: tpu7x:2x2x1
jax: 0.10.0
libtpu: 0.0.40
codegen_flags: <defaults>
</compile_context>

<pallas_src>
import functools

import jax
import jax.numpy as jnp
from jax.experimental import pallas as pl
from jax.experimental.pallas import tpu as pltpu


def _cdiv(a, b):
    return (a + b - 1) // b


def _round_up(x, m):
    return _cdiv(x, m) * m


def _default_min_grid_steps():
    """v7x has 2 TensorCores per chip -> want >= 2 grid steps."""
    try:
        kind = jax.devices()[0].device_kind.lower()
        if "v7" in kind:
            return 2
    except Exception:
        pass
    return 1


def actor_kernel(x_ref, w1_ref, b1_ref, w2_ref, b2_ref, w3_ref, b3_ref,
                 o_ref, *, maxaction):
    # Cast the f32 state tile to bf16 in-register (no wrapper-side slab).
    x = x_ref[...].astype(jnp.bfloat16)
    # l1 + ReLU  (bf16 x bf16 -> f32 accumulate on the MXU)
    h = jnp.dot(x, w1_ref[...], preferred_element_type=jnp.float32)
    h = jnp.maximum(h + b1_ref[...], 0.0)
    # l2 + ReLU
    h = jnp.dot(h.astype(jnp.bfloat16), w2_ref[...],
                preferred_element_type=jnp.float32)
    h = jnp.maximum(h + b2_ref[...], 0.0)
    # l3 + tanh * maxaction  (epilogue kept in f32; tanh rides the EUP slot)
    h = jnp.dot(h.astype(jnp.bfloat16), w3_ref[...],
                preferred_element_type=jnp.float32)
    o_ref[...] = (jnp.tanh(h + b3_ref[...]) * maxaction).astype(o_ref.dtype)


def actor_forward(state, padded_params, maxaction, *, block_batch=1024,
                  min_grid_steps=None):
    """state: [B, state_dim] f32 -> action: [B, action_dim] f32."""
    w1, b1, w2, b2, w3, b3 = padded_params
    B, state_dim = state.shape
    assert w1.shape[0] == state_dim
    W = w1.shape[1]            # padded net_width (multiple of 128)
    action_dim = w3.shape[1]   # un-padded action_dim

    if min_grid_steps is None:
        min_grid_steps = _default_min_grid_steps()

    # Grid first, then tile: padding waste is < TB rows (not < block_batch).
    grid = max(_cdiv(B, block_batch), min_grid_steps)
    grid = min(grid, max(_cdiv(B, 16), 1))      # keep tiles >= 16 rows
    TB = _round_up(_cdiv(B, grid), 16)          # 16-row sublane-clean tiles
    B_pad = grid * TB

    # Only pad rows when needed (cheap; at most TB-1 zero rows).
    if B_pad != B:
        state_in = jnp.pad(state, ((0, B_pad - B), (0, 0)))
    else:
        state_in = state

    kernel = functools.partial(actor_kernel, maxaction=float(maxaction))

    cost = pl.CostEstimate(
        flops=2 * B_pad * (state_dim * W + W * W + W * action_dim),
        transcendentals=B_pad * action_dim,                     # tanh
        bytes_accessed=(B_pad * state_dim * 4
                        + w1.size * 2 + w2.size * 2 + w3.size * 2
                        + b1.size * 4 + b2.size * 4 + b3.size * 4
                        + B_pad * action_dim * 4),
    )

    out = pl.pallas_call(
        kernel,
        out_shape=jax.ShapeDtypeStruct((B_pad, action_dim), jnp.float32),
        grid=(grid,),
        in_specs=[
            pl.BlockSpec((TB, state_dim), lambda i: (i, 0)),   # state tile
            pl.BlockSpec((state_dim, W), lambda i: (0, 0)),    # w1 (resident)
            pl.BlockSpec((1, W), lambda i: (0, 0)),            # b1
            pl.BlockSpec((W, W), lambda i: (0, 0)),            # w2
            pl.BlockSpec((1, W), lambda i: (0, 0)),            # b2
            pl.BlockSpec((W, action_dim), lambda i: (0, 0)),   # w3
            pl.BlockSpec((1, action_dim), lambda i: (0, 0)),   # b3
        ],
        out_specs=pl.BlockSpec((TB, action_dim), lambda i: (i, 0)),
        compiler_params=pltpu.CompilerParams(
            dimension_semantics=("parallel",)),   # batch split across TCs
        cost_estimate=cost,
    )(state_in, w1, b1, w2, b2, w3, b3)

    return out[:B] if B_pad != B else out


def init_actor_params(key, state_dim, net_width, action_dim):
    """f32 params mimicking nn.Linear's default U(-1/sqrt(fan_in), ...).

    Stored as [in, out] (transpose of PyTorch's [out, in]); bias is [1, out].
    """
    def linear_init(k, fan_in, fan_out):
        kw, kb = jax.random.split(k)
        bound = 1.0 / jnp.sqrt(fan_in)
        w = jax.random.uniform(kw, (fan_in, fan_out), jnp.float32, -bound, bound)
        b = jax.random.uniform(kb, (1, fan_out), jnp.float32, -bound, bound)
        return w, b

    k1, k2, k3 = jax.random.split(key, 3)
    w1, b1 = linear_init(k1, state_dim, net_width)
    w2, b2 = linear_init(k2, net_width, net_width)
    w3, b3 = linear_init(k3, net_width, action_dim)
    return (w1, b1, w2, b2, w3, b3)


def pad_actor_params(params, state_dim, net_width, action_dim):
    """Pad only net_width to a 128-lane multiple; weights cast to bf16.

    state_dim / action_dim stay un-padded (full-dim blocks in the kernel).
    Padded weight rows/cols and bias lanes are zero, so padded hidden lanes
    stay exactly zero through ReLU and contribute nothing downstream.
    """
    w1, b1, w2, b2, w3, b3 = params
    W = _round_up(net_width, 128)

    w1p = jnp.zeros((state_dim, W), jnp.bfloat16).at[:, :net_width].set(
        w1.astype(jnp.bfloat16))
    b1p = jnp.zeros((1, W), jnp.float32).at[:, :net_width].set(b1)
    w2p = jnp.zeros((W, W), jnp.bfloat16).at[:net_width, :net_width].set(
        w2.astype(jnp.bfloat16))
    b2p = jnp.zeros((1, W), jnp.float32).at[:, :net_width].set(b2)
    w3p = jnp.zeros((W, action_dim), jnp.bfloat16).at[:net_width, :].set(
        w3.astype(jnp.bfloat16))
    b3p = b3.astype(jnp.float32)
    return (w1p, b1p, w2p, b2p, w3p, b3p)


def actor_forward_ref(state, params, maxaction):
    """Plain-JAX f32 reference (PyTorch-equivalent semantics)."""
    w1, b1, w2, b2, w3, b3 = params
    a = jnp.maximum(state @ w1 + b1, 0.0)
    a = jnp.maximum(a @ w2 + b2, 0.0)
    return jnp.tanh(a @ w3 + b3) * maxaction


def actor_forward_ref_bf16(state, padded_params, maxaction):
    """Plain-JAX reference with identical bf16-weight / f32-accum numerics."""
    w1, b1, w2, b2, w3, b3 = padded_params
    x = state.astype(jnp.bfloat16)
    h = jnp.maximum(
        jnp.dot(x, w1, preferred_element_type=jnp.float32) + b1, 0.0)
    h = jnp.maximum(
        jnp.dot(h.astype(jnp.bfloat16), w2,
                preferred_element_type=jnp.float32) + b2, 0.0)
    h = jnp.dot(h.astype(jnp.bfloat16), w3, preferred_element_type=jnp.float32)
    return jnp.tanh(h + b3) * maxaction


if __name__ == "__main__":
    # Small shapes consistent with the module's forward pass.
    batch = 4
    state_dim = 16
    net_width = 32
    action_dim = 8
    maxaction = 2.0

    key = jax.random.PRNGKey(0)
    k_params, k_state = jax.random.split(key)

    params = init_actor_params(k_params, state_dim, net_width, action_dim)
    padded_params = pad_actor_params(params, state_dim, net_width, action_dim)
    state = jax.random.normal(k_state, (batch, state_dim), jnp.float32)

    out = actor_forward(state, padded_params, maxaction)
    out = jax.block_until_ready(out)
    assert out.shape == (batch, action_dim)

    # Tight check vs. a plain-JAX run with identical bf16 numerics.
    ref_bf16 = actor_forward_ref_bf16(state, padded_params, maxaction)
    assert jnp.allclose(out, ref_bf16, atol=2e-3, rtol=2e-3), \
        "mismatch vs bf16 reference"

    # Semantics check vs. the f32 (PyTorch-equivalent) reference; tolerance
    # accounts for the bf16 weight/activation rounding.
    ref_f32 = actor_forward_ref(state, params, maxaction)
    assert jnp.allclose(out, ref_f32, atol=5e-2, rtol=5e-2), \
        "mismatch vs f32 reference"

    print("KERNEL_OK")
</pallas_src>

<mosaic_0001>
module attributes {stable_mosaic.version = 11 : i64} {
  func.func @actor_kernel(%arg0: i32, %arg1: memref<16x16xf32, #tpu.memory_space<vmem>>, %arg2: memref<16x128xbf16, #tpu.memory_space<vmem>>, %arg3: memref<1x128xf32, #tpu.memory_space<vmem>>, %arg4: memref<128x128xbf16, #tpu.memory_space<vmem>>, %arg5: memref<1x128xf32, #tpu.memory_space<vmem>>, %arg6: memref<128x8xbf16, #tpu.memory_space<vmem>>, %arg7: memref<1x8xf32, #tpu.memory_space<vmem>>, %arg8: memref<16x8xf32, #tpu.memory_space<vmem>>) attributes {dimension_semantics = [#tpu.dimension_semantics<parallel>], iteration_bounds = array<i64: 1>, scalar_prefetch = 0 : i64, scratch_operands = 0 : i64, tpu.core_type = #tpu.core_type<tc>, window_params = [{transform_indices = @transform_0, window_bounds = array<i64: 16, 16>}, {pipeline_mode = #tpu.pipeline_mode<synchronous>, transform_indices = @transform_1, window_bounds = array<i64: 16, 128>}, {pipeline_mode = #tpu.pipeline_mode<synchronous>, transform_indices = @transform_2, window_bounds = array<i64: 1, 128>}, {pipeline_mode = #tpu.pipeline_mode<synchronous>, transform_indices = @transform_3, window_bounds = array<i64: 128, 128>}, {pipeline_mode = #tpu.pipeline_mode<synchronous>, transform_indices = @transform_4, window_bounds = array<i64: 1, 128>}, {pipeline_mode = #tpu.pipeline_mode<synchronous>, transform_indices = @transform_5, window_bounds = array<i64: 128, 8>}, {pipeline_mode = #tpu.pipeline_mode<synchronous>, transform_indices = @transform_6, window_bounds = array<i64: 1, 8>}, {transform_indices = @transform_7, window_bounds = array<i64: 16, 8>}]} {
    %c0 = arith.constant 0 : index
    %c0_0 = arith.constant 0 : index
    %0 = vector.load %arg1[%c0, %c0_0] : memref<16x16xf32, #tpu.memory_space<vmem>>, vector<16x16xf32>
    %1 = arith.truncf %0 : vector<16x16xf32> to vector<16x16xbf16>
    %c0_1 = arith.constant 0 : index
    %c0_2 = arith.constant 0 : index
    %2 = vector.load %arg2[%c0_1, %c0_2] : memref<16x128xbf16, #tpu.memory_space<vmem>>, vector<16x128xbf16>
    %cst = arith.constant dense<0.000000e+00> : vector<16x128xf32>
    %3 = tpu.matmul %1, %2, %cst {dimension_numbers = #tpu.dot_dimension_numbers<[1], [0], [0], [1], [0, 0, 1, 1], [], []>} : vector<16x16xbf16>, vector<16x128xbf16>, vector<16x128xf32> -> vector<16x128xf32>
    %c0_3 = arith.constant 0 : index
    %c0_4 = arith.constant 0 : index
    %4 = vector.load %arg3[%c0_3, %c0_4] : memref<1x128xf32, #tpu.memory_space<vmem>>, vector<1x128xf32>
    %5 = vector.broadcast %4 : vector<1x128xf32> to vector<16x128xf32>
    %6 = arith.addf %3, %5 : vector<16x128xf32>
    %cst_5 = arith.constant 0.000000e+00 : f32
    %7 = vector.broadcast %cst_5 : f32 to vector<16x128xf32>
    %8 = arith.maximumf %6, %7 : vector<16x128xf32>
    %9 = arith.truncf %8 : vector<16x128xf32> to vector<16x128xbf16>
    %c0_6 = arith.constant 0 : index
    %c0_7 = arith.constant 0 : index
    %10 = vector.load %arg4[%c0_6, %c0_7] : memref<128x128xbf16, #tpu.memory_space<vmem>>, vector<128x128xbf16>
    %cst_8 = arith.constant dense<0.000000e+00> : vector<16x128xf32>
    %11 = tpu.matmul %9, %10, %cst_8 {dimension_numbers = #tpu.dot_dimension_numbers<[1], [0], [0], [1], [0, 0, 1, 1], [], []>} : vector<16x128xbf16>, vector<128x128xbf16>, vector<16x128xf32> -> vector<16x128xf32>
    %c0_9 = arith.constant 0 : index
    %c0_10 = arith.constant 0 : index
    %12 = vector.load %arg5[%c0_9, %c0_10] : memref<1x128xf32, #tpu.memory_space<vmem>>, vector<1x128xf32>
    %13 = vector.broadcast %12 : vector<1x128xf32> to vector<16x128xf32>
    %14 = arith.addf %11, %13 : vector<16x128xf32>
    %cst_11 = arith.constant 0.000000e+00 : f32
    %15 = vector.broadcast %cst_11 : f32 to vector<16x128xf32>
    %16 = arith.maximumf %14, %15 : vector<16x128xf32>
    %17 = arith.truncf %16 : vector<16x128xf32> to vector<16x128xbf16>
    %c0_12 = arith.constant 0 : index
    %c0_13 = arith.constant 0 : index
    %18 = vector.load %arg6[%c0_12, %c0_13] : memref<128x8xbf16, #tpu.memory_space<vmem>>, vector<128x8xbf16>
    %cst_14 = arith.constant dense<0.000000e+00> : vector<16x8xf32>
    %19 = tpu.matmul %17, %18, %cst_14 {dimension_numbers = #tpu.dot_dimension_numbers<[1], [0], [0], [1], [0, 0, 1, 1], [], []>} : vector<16x128xbf16>, vector<128x8xbf16>, vector<16x8xf32> -> vector<16x8xf32>
    %c0_15 = arith.constant 0 : index
    %c0_16 = arith.constant 0 : index
    %20 = vector.load %arg7[%c0_15, %c0_16] : memref<1x8xf32, #tpu.memory_space<vmem>>, vector<1x8xf32>
    %21 = vector.broadcast %20 : vector<1x8xf32> to vector<16x8xf32>
    %22 = arith.addf %19, %21 : vector<16x8xf32>
    %23 = math.tanh %22 : vector<16x8xf32>
    %cst_17 = arith.constant 2.000000e+00 : f32
    %24 = vector.broadcast %cst_17 : f32 to vector<16x8xf32>
    %25 = arith.mulf %23, %24 : vector<16x8xf32>
    %c0_18 = arith.constant 0 : index
    %c0_19 = arith.constant 0 : index
    %26 = vector.load %arg8[%c0_18, %c0_19] : memref<16x8xf32, #tpu.memory_space<vmem>>, vector<16x8xf32>
    tpu.vector_store %arg8[%c0_18, %c0_19], %25 {strides = array<i32>} : memref<16x8xf32, #tpu.memory_space<vmem>>, vector<16x8xf32>,
    return
  }
  func.func @transform_0(%arg0: i32) -> (i32, i32) {
    %c0_i32 = arith.constant 0 : i32
    %c0_i32_0 = arith.constant 0 : i32
    return %arg0, %c0_i32 : i32, i32
  }
  func.func @transform_1(%arg0: i32) -> (i32, i32) {
    %c0_i32 = arith.constant 0 : i32
    %c0_i32_0 = arith.constant 0 : i32
    %c0_i32_1 = arith.constant 0 : i32
    return %c0_i32, %c0_i32_0 : i32, i32
  }
  func.func @transform_2(%arg0: i32) -> (i32, i32) {
    %c0_i32 = arith.constant 0 : i32
    %c0_i32_0 = arith.constant 0 : i32
    %c0_i32_1 = arith.constant 0 : i32
    return %c0_i32, %c0_i32_0 : i32, i32
  }
  func.func @transform_3(%arg0: i32) -> (i32, i32) {
    %c0_i32 = arith.constant 0 : i32
    %c0_i32_0 = arith.constant 0 : i32
    %c0_i32_1 = arith.constant 0 : i32
    return %c0_i32, %c0_i32_0 : i32, i32
  }
  func.func @transform_4(%arg0: i32) -> (i32, i32) {
    %c0_i32 = arith.constant 0 : i32
    %c0_i32_0 = arith.constant 0 : i32
    %c0_i32_1 = arith.constant 0 : i32
    return %c0_i32, %c0_i32_0 : i32, i32
  }
  func.func @transform_5(%arg0: i32) -> (i32, i32) {
    %c0_i32 = arith.constant 0 : i32
    %c0_i32_0 = arith.constant 0 : i32
    %c0_i32_1 = arith.constant 0 : i32
    return %c0_i32, %c0_i32_0 : i32, i32
  }
  func.func @transform_6(%arg0: i32) -> (i32, i32) {
    %c0_i32 = arith.constant 0 : i32
    %c0_i32_0 = arith.constant 0 : i32
    %c0_i32_1 = arith.constant 0 : i32
    return %c0_i32, %c0_i32_0 : i32, i32
  }
  func.func @transform_7(%arg0: i32) -> (i32, i32) {
    %c0_i32 = arith.constant 0 : i32
    %c0_i32_0 = arith.constant 0 : i32
    return %arg0, %c0_i32 : i32, i32
  }
}

</mosaic_0001>

<bundles_post_ra>
// kernel: tpu_custom_call.1
= control target key start
LH: loop header
LB: loop body
LE: loop exit
PB: predicated region body
PF: predicated region fallthrough
CT: control target
= control target key end

     0   :  { %12 = vsyncpa [#allocation3], 0  ;;  %s483_s24 = smov [#allocation2]   ;;  %s629_s0 = inlined_call_operand.hbm [shape: f32[16,16], index: 0, kind: input, shape index: {}]   ;;  %s630_s1 = inlined_call_operand.vmem [shape: bf16[16,128], index: 1, kind: input, shape index: {}]   ;;  %s631_s2 = inlined_call_operand.vmem [shape: f32[1,128], index: 2, kind: input, shape index: {}]   ;;  %s632_s3 = inlined_call_operand.vmem [shape: bf16[128,128], index: 3, kind: input, shape index: {}]   ;;  %s633_s4 = inlined_call_operand.vmem [shape: f32[1,128], index: 4, kind: input, shape index: {}]   ;;  %s634_s5 = inlined_call_operand.vmem [shape: bf16[128,8], index: 5, kind: input, shape index: {}]   ;;  %s635_s6 = inlined_call_operand.vmem [shape: f32[1,8], index: 6, kind: input, shape index: {}]   ;;  %s636_s7 = inlined_call_operand.vmem [shape: f32[16,8], index: 7, kind: output, shape index: {}]  }
   0x1   :  { %s18_s25 = sshll.u32 %s483_s24, 4  ;;  %s459_s28 = scalar_lea.hbm %s629_s0, 256  ;;  %s19_s25 = int_to_ptr.vmem [resolvable:$true] %s18_s25 }
   0x2   :  { %p460_p0 = scmp.ne.s32.totalorder %s629_s0, %s459_s28  ;;  %p463_p1 = scmp.lt.u32.totalorder %s459_s28, %s629_s0 }
   0x4   :  { %p465_p2 = pnand %p463_p1, %p460_p0 }
   0x6   :  { %468 = shalt.err (!%p465_p2)
}
   0x7   :  { %s469_s10 = scalar_lea.vmem %s19_s25, 256  ;;  %p474_p4 = scmp.lt.s32.totalorder %s19_s25, %s19_s25 }
   0x8   :  { %p470_p3 = scmp.ne.s32.totalorder %s19_s25, %s469_s10  ;;  %p475_p5 = scmp.lt.s32.totalorder %s469_s10, %s469_s10 }
   0xa   :  { %p476_p6 = por %p475_p5, %p474_p4 }
   0xc   :  { %p477_p7 = pnand %p476_p6, %p470_p3 }
   0xe   :  { %480 = shalt.err (!%p477_p7)
}
   0xf   :  { %s484_s11 = smov 128   ;;  %s485_s12 = smov 8  }
  0x10   :  { %24 = dma.hbm_to_vmem [thread:$0]  %s629_s0, 256, %s19_s25, [#allocation3], %s484_s11, %s484_s11, %s485_s12  }
  0x11   :  { %481 = dma.done.wait [#allocation3], 256  }
  0x12   :  { %482 = vsyncadd [#allocation3], 4294967040  ;;  %v486_v0 = vmov 0.0   ;;  %vm487_vm0 = vmmov 0   ;;  %v438_v1 = vld [vmem:[%s630_s1] sm:$0xff]   ;;  %v42_v3 = vld [vmem:[#allocation2 + $0x8] sm:$0xff] }
  0x13   :  { %387 = vmatprep.subr.bf16.mxu0 %v486_v0  ;;  %389 = vmatprep.mubr.msk.bf16.mxu0 %vm487_vm0, %v486_v0  ;;  %v41_v2 = vld [vmem:[#allocation2] sm:$0xff]  ;;  %vm59_vm1 = vcmask 130048   ;;  %v440_v6 = vld [vmem:[%s632_s3 + $0x8] sm:$0xff]   ;;  %v441_v7 = vld [vmem:[%s632_s3 + $0x10] sm:$0xff]   ;;  %vm338_vm2 = vcmask 64512  }
  0x14   :  { %393 = vmatprep.subr.bf16.mxu1 %v486_v0  ;;  %409 = vmatprep.mubr.msk.bf16.mxu1 %vm487_vm0, %v486_v0  ;;  %v43_v4 = vpack.c.bf16 %v42_v3, %v41_v2  ;;  %v439_v5 = vld [vmem:[%s632_s3] sm:$0xff]   ;;  %v442_v8 = vld [vmem:[%s632_s3 + $0x18] sm:$0xff]   ;;  %v444_v10 = vld [vmem:[%s632_s3 + $0x28] sm:$0xff]  }
  0x15   :  { %388 = vmatpush3.bf16.msra.mxu0 %v438_v1  ;;  %394 = vmatpush3.bf16.msra.mxu1 %v439_v5  ;;  %v443_v9 = vld [vmem:[%s632_s3 + $0x20] sm:$0xff]   ;;  %v445_v11 = vld [vmem:[%s632_s3 + $0x30] sm:$0xff]   ;;  %v446_v12 = vld [vmem:[%s632_s3 + $0x38] sm:$0xff]  }
  0x16   :  { %413 = vmatprep.subr.bf16.mxu0 %v486_v0  ;;  %395 = vmatprep.subr.bf16.mxu1 %v486_v0  ;;  %v447_v13 = vld [vmem:[%s634_s5] sm:$0xff]   ;;  %v448_v14 = vld [vmem:[%s634_s5 + $0x8] sm:$0xff]   ;;  %v449_v15 = vld [vmem:[%s634_s5 + $0x10] sm:$0xff]  }
  0x17   :  { %v450_v16 = vld [vmem:[%s634_s5 + $0x18] sm:$0xff]   ;;  %v451_v17 = vld [vmem:[%s634_s5 + $0x20] sm:$0xff]   ;;  %v452_v18 = vld [vmem:[%s634_s5 + $0x28] sm:$0xff]  }
  0x18   :  { %390 = vmatmul.mubr.msk.bf16.vlgmr.msra.gmra.mrb[0].mxu0 %vm59_vm1, %v43_v4  ;;  %v346_v19 = vld [vmem:[%s631_s2] ss:$0 sm:$0xff]  ;;  %v453_v29 = vld [vmem:[%s634_s5 + $0x30] sm:$0xff]   ;;  %v454_v30 = vld [vmem:[%s634_s5 + $0x38] sm:$0xff]  }
  0x19   :  { %429 = vmatprep.mubr.msk.bf16.mxu0 %vm487_vm0, %v486_v0  ;;  %396 = vmatpush3.bf16.msra.mxu1 %v440_v6  ;;  %v349_v31 = vld [vmem:[%s633_s4] ss:$0 sm:$0xff] }
  0x1a   :  { %397 = vmatprep.subr.bf16.mxu1 %v486_v0  ;;  %414 = vmatpush3.bf16.msra.mxu0 %v447_v13  ;;  %v358_v41 = vld [vmem:[%s635_s6] ss:$0 sm:$0xff] }
  0x1b   :  { %415 = vmatprep.subr.bf16.mxu0 %v486_v0 }
  0x1d   :  { %398 = vmatpush3.bf16.msra.mxu1 %v441_v7 }
  0x1e   :  { %399 = vmatprep.subr.bf16.mxu1 %v486_v0  ;;  %416 = vmatpush3.bf16.msra.mxu0 %v448_v14 }
  0x1f   :  { %417 = vmatprep.subr.bf16.mxu0 %v486_v0 }
  0x21   :  { %400 = vmatpush3.bf16.msra.mxu1 %v442_v8 }
  0x22   :  { %401 = vmatprep.subr.bf16.mxu1 %v486_v0  ;;  %418 = vmatpush3.bf16.msra.mxu0 %v449_v15 }
  0x23   :  { %419 = vmatprep.subr.bf16.mxu0 %v486_v0 }
  0x25   :  { %402 = vmatpush3.bf16.msra.mxu1 %v443_v9 }
  0x26   :  { %403 = vmatprep.subr.bf16.mxu1 %v486_v0  ;;  %420 = vmatpush3.bf16.msra.mxu0 %v450_v16 }
  0x27   :  { %421 = vmatprep.subr.bf16.mxu0 %v486_v0 }
  0x29   :  { %404 = vmatpush3.bf16.msra.mxu1 %v444_v10 }
  0x2a   :  { %405 = vmatprep.subr.bf16.mxu1 %v486_v0  ;;  %422 = vmatpush3.bf16.msra.mxu0 %v451_v17 }
  0x2b   :  { %423 = vmatprep.subr.bf16.mxu0 %v486_v0 }
  0x2d   :  { %406 = vmatpush3.bf16.msra.mxu1 %v445_v11 }
  0x2e   :  { %407 = vmatprep.subr.bf16.mxu1 %v486_v0  ;;  %424 = vmatpush3.bf16.msra.mxu0 %v452_v18 }
  0x2f   :  { %425 = vmatprep.subr.bf16.mxu0 %v486_v0 }
  0x31   :  { %408 = vmatpush3.bf16.msra.mxu1 %v446_v12 }
  0x32   :  { %426 = vmatpush3.bf16.msra.mxu0 %v453_v29 }
  0x33   :  { %427 = vmatprep.subr.bf16.mxu0 %v486_v0 }
  0x36   :  { %428 = vmatpush3.bf16.msra.mxu0 %v454_v30 }
  0xeb   :  { %v97_v20 = vpop.f32.mrb[0].mxu0 }
  0xec   :  { %v98_v21 = vadd.f32 %v346_v19, %v97_v20  ;;  %v391_v22 = vpop.f32.mrb[1].mxu0 }
  0xed   :  { %v100_v23 = vpop.f32.mrb[2].mxu0 }
  0xee   :  { %v101_v24 = vadd.f32 %v346_v19, %v100_v23  ;;  %v392_v25 = vpop.f32.mrb[3].mxu0  ;;  %v104_v26 = vmax.f32 %v98_v21, 0.0 }
  0xf0   :  { %v105_v27 = vmax.f32 %v101_v24, 0.0 }
  0xf2   :  { %v106_v28 = vpack.c.bf16 %v105_v27, %v104_v26 }
  0xf4   :  { %410 = vmatmul.mubr.bf16.vlgmr.msra.gmra.mrb[0].mxu1 %v106_v28 }
 0x1c7   :  { %v212_v32 = vpop.f32.mrb[0].mxu1 }
 0x1c8   :  { %v213_v33 = vadd.f32 %v349_v31, %v212_v32  ;;  %v411_v34 = vpop.f32.mrb[1].mxu1 }
 0x1c9   :  { %v215_v35 = vpop.f32.mrb[2].mxu1 }
 0x1ca   :  { %v216_v36 = vadd.f32 %v349_v31, %v215_v35  ;;  %v412_v37 = vpop.f32.mrb[3].mxu1  ;;  %v219_v38 = vmax.f32 %v213_v33, 0.0 }
 0x1cc   :  { %v220_v39 = vmax.f32 %v216_v36, 0.0 }
 0x1ce   :  { %v221_v40 = vpack.c.bf16 %v220_v39, %v219_v38 }
 0x1d0   :  { %430 = vmatmul.mubr.bf16.vlgmr.msra.gmra.mrb[4].mxu0 %v221_v40 }
 0x2a3   :  { %v327_v42 = vpop.f32.mrb[4].mxu0 }
 0x2a4   :  { %v328_v43 = vadd.f32 %v358_v41, %v327_v42  ;;  %v431_v44 = vpop.f32.mrb[5].mxu0 }
 0x2a5   :  { %v330_v45 = vpop.f32.mrb[6].mxu0 }
 0x2a6   :  { %455 = vtanh.f32 %v328_v43  ;;  %v331_v46 = vadd.f32 %v358_v41, %v330_v45  ;;  %v432_v47 = vpop.f32.mrb[7].mxu0 }
 0x2a8   :  { %457 = vtanh.f32 %v331_v46 }
 0x2b0   :  { %v456_v48 = vpop.eup %455 }
 0x2b1   :  { %v336_v49 = vmul.f32 2.0, %v456_v48 }
 0x2b2   :  { %v458_v50 = vpop.eup %457 }
 0x2b3   :  { %339 = vst.msk [vmem:[%s636_s7] sm:$0xff] %vm338_vm2, %v336_v49  ;;  %v337_v51 = vmul.f32 2.0, %v458_v50 }
 0x2b5   :  { %340 = vst.msk [vmem:[%s636_s7 + $0x8] sm:$0xff] %vm338_vm2, %v337_v51 }
 0x2b6   :  { %345 = vsyncpa [#allocation3], 1 }

</bundles_post_ra>
